<compile_context>
chip_gen: v7x
topology: tpu7x:2x2x1
jax: 0.10.0
libtpu: 0.0.40
codegen_flags: <defaults>
</compile_context>

<pallas_src>
import math

import jax
import jax.numpy as jnp
from jax.experimental import pallas as pl
from jax.experimental.pallas import tpu as pltpu


def _patch_embed_kernel(x_ref, u_ref, b_ref, o_ref):
    # x_ref: (TR, W) bf16   u_ref: (W, TNE) bf16   b_ref: (1, TNE) f32
    # o_ref: (TR, TNE) out_dtype
    acc = jnp.dot(x_ref[...], u_ref[...], preferred_element_type=jnp.float32)
    o_ref[...] = (acc + b_ref[...]).astype(o_ref.dtype)


def _round_down(x, m):
    return (x // m) * m


def _vmem_capacity_bytes():
    """Per-core VMEM capacity, with a conservative fallback (v7x = 64 MiB/TC)."""
    try:
        info = pltpu.get_tpu_info()
        cap = int(getattr(info, "vmem_capacity_bytes", 0) or 0)
        if cap > 0:
            return cap
    except Exception:
        pass
    return 64 << 20


def _choose_patch_band(N, E, stride, patch_len, budget_bytes, ne_tile=None):
    """Patches per band (TNp) such that TNp*E is 256/128-aligned (or == N*E)."""

    def u_bytes(tnp):
        w_len = (tnp - 1) * stride + patch_len
        return w_len * tnp * E * 2  # bf16 banded projection matrix

    target = max(1, (int(ne_tile) if ne_tile is not None else 4096) // max(E, 1))
    if ne_tile is None and target >= N and u_bytes(N) <= budget_bytes // 4:
        return N  # single band: output block width == NE (full-dim block)
    a = 256 // math.gcd(E, 256)          # TNp multiple of a -> TNp*E % 256 == 0
    if a > N:
        a = 128 // math.gcd(E, 128)      # fall back to 128-lane alignment
    if a >= N:
        return N                         # too few patches to band-tile
    tnp = min(N, max(a, (min(target, N) // a) * a))
    while tnp > a and u_bytes(tnp) > budget_bytes // 4:
        tnp = max(a, _round_down(tnp // 2, a))
    return tnp


def _build_band_matrices(weight, bias, tnp, patch_len, stride):
    """Banded U (W, TNp*E) in bf16 and flat bias (1, TNp*E) in f32 such that
    (unfold + linear) over one band's window == x_window @ U + b."""
    E = weight.shape[0]
    w_len = (tnp - 1) * stride + patch_len
    w_idx = jnp.arange(w_len)[:, None]                  # (W, 1)
    p_idx = jnp.arange(tnp)[None, :]                    # (1, TNp)
    rel = w_idx - p_idx * stride                        # (W, TNp)
    valid = (rel >= 0) & (rel < patch_len)
    rel_c = jnp.clip(rel, 0, patch_len - 1)
    wt = weight.T.astype(jnp.float32)                   # (patch_len, E)
    u = jnp.where(valid[:, :, None], wt[rel_c], 0.0)    # (W, TNp, E)
    u = u.reshape(w_len, tnp * E).astype(jnp.bfloat16)
    b = jnp.tile(bias.astype(jnp.float32), tnp).reshape(1, tnp * E)
    return u, b


def patch_embedding(x, weight, bias, patch_len, stride, padding=True,
                    *, row_tile=None, ne_tile=None, out_dtype=None):
    """Pallas TPU implementation of Patch_Embedding.forward.

    x:      (B, C, L)            float32
    weight: (emb_dim, patch_len) float32   (PyTorch nn.Linear layout)
    bias:   (emb_dim,)           float32
    returns (B, C, N, emb_dim)   in out_dtype (defaults to x.dtype)
    """
    B, C, L = x.shape
    E = weight.shape[0]
    BC = B * C
    Lp = L + stride if padding else L
    N = (Lp - patch_len) // stride + 1
    assert N >= 1, "sequence too short for the given patch_len/stride"
    NE = N * E
    out_dtype = x.dtype if out_dtype is None else out_dtype
    out_sz = jnp.dtype(out_dtype).itemsize

    capacity = _vmem_capacity_bytes()
    budget = max(capacity - (16 << 20), 8 << 20)   # leave pipeline headroom

    # ---- patch-band (output-column) tile ------------------------------------
    tnp = _choose_patch_band(N, E, stride, patch_len, budget, ne_tile)
    nb = pl.cdiv(N, tnp)
    tne = tnp * E
    w_len = (tnp - 1) * stride + patch_len         # overlapping window per band

    # ---- row tile -------------------------------------------------------------
    if row_tile is None:
        # v5e/v6e (128 MiB VMEM): larger row tiles; v7x (64 MiB/TC): smaller.
        row_tile = 1024 if capacity >= (96 << 20) else 512
    if BC < 8:
        tr = BC                                    # full-dim block (allowed)
    else:
        tr = min(BC, row_tile)
        tr = _round_down(tr, 256) if tr >= 256 else max(8, _round_down(tr, 8))

    def usage(rows):
        return (2 * rows * w_len * 2               # double-buffered bf16 x tiles
                + 2 * rows * tne * out_sz          # double-buffered output tiles
                + 2 * (w_len * tne * 2 + max(tne, 128) * 4)   # U band + bias
                + rows * tne * 4                   # f32 accumulator before astype
                + (2 << 20))                       # misc slack

    while tr > 8 and usage(tr) > budget:
        tr = max(8, _round_down(tr // 2, 8))
    # Prefer >= ~8 grid steps (pipelining; >=4 per TensorCore on v7x).
    min_tr = 8 if BC <= 128 else 64
    while tr > min_tr and pl.cdiv(BC, tr) * nb < 8:
        tr = max(min_tr, _round_down(tr // 2, 8))

    # ---- operands -------------------------------------------------------------
    x_bf = x.reshape(BC, L).astype(jnp.bfloat16)
    starts = jnp.arange(nb, dtype=jnp.int32) * (tnp * stride)
    cols = starts[:, None] + jnp.arange(w_len, dtype=jnp.int32)[None, :]
    # min(col, L-1) implements the replicate pad (positions >= L read x[..., L-1])
    # and clamps the unused columns of the last partial band.
    cols = jnp.minimum(cols, L - 1)
    x_bands = jnp.swapaxes(jnp.take(x_bf, cols, axis=1), 0, 1)   # (NB, BC, W) bf16

    u, b_flat = _build_band_matrices(weight, bias, tnp, patch_len, stride)

    vmem_limit = int(min(capacity - (4 << 20), max(usage(tr) + (4 << 20), 16 << 20)))
    cost = pl.CostEstimate(
        flops=int(2 * BC * w_len * nb * tne),
        transcendentals=0,
        bytes_accessed=int(x_bands.size * 2 + u.size * 2 + b_flat.size * 4
                           + BC * NE * out_sz),
    )

    grid = (pl.cdiv(BC, tr), nb)

    def _run(const_mode):
        kw = {} if const_mode is None else {"pipeline_mode": const_mode}
        return pl.pallas_call(
            _patch_embed_kernel,
            out_shape=jax.ShapeDtypeStruct((BC, NE), out_dtype),
            grid=grid,
            in_specs=[
                # streamed row tile of the band's input window
                pl.BlockSpec((None, tr, w_len), lambda i, j: (j, i, 0)),
                # grid-invariant banded projection matrix + bias (VMEM-resident)
                pl.BlockSpec((w_len, tne), lambda i, j: (0, 0), **kw),
                pl.BlockSpec((1, tne), lambda i, j: (0, 0), **kw),
            ],
            out_specs=pl.BlockSpec((tr, tne), lambda i, j: (i, j)),  # lane-dense
            compiler_params=pltpu.CompilerParams(
                dimension_semantics=("parallel", "parallel"),
                vmem_limit_bytes=vmem_limit,
            ),
            cost_estimate=cost,
        )(x_bands, u, b_flat)

    const_mode = pl.Buffered(1) if hasattr(pl, "Buffered") else None
    if const_mode is None:
        out2d = _run(None)
    else:
        try:
            out2d = _run(const_mode)          # single-buffer the constants
        except Exception:
            out2d = _run(None)                # fall back to default buffering

    return out2d.reshape(B, C, N, E)


if __name__ == "__main__":
    # module config
    patch_len, stride, emb_dim = 8, 4, 32

    key = jax.random.PRNGKey(0)
    kx, kw, kb, kx2 = jax.random.split(key, 4)
    weight = jax.random.normal(kw, (emb_dim, patch_len), dtype=jnp.float32) * 0.1
    bias = jax.random.normal(kb, (emb_dim,), dtype=jnp.float32) * 0.1

    def reference(xr, padding):
        xp = xr
        if padding:
            xp = jnp.concatenate(
                [xr, jnp.repeat(xr[..., -1:], stride, axis=-1)], axis=-1)
        n = (xp.shape[-1] - patch_len) // stride + 1
        idx = jnp.arange(n)[:, None] * stride + jnp.arange(patch_len)[None, :]
        return jnp.einsum("bcnp,ep->bcne", xp[..., idx], weight) + bias

    # 1) small shape, single patch band, f32 output (module defaults)
    x = jax.random.normal(kx, (2, 4, 16), dtype=jnp.float32)
    out = jax.block_until_ready(
        patch_embedding(x, weight, bias, patch_len, stride, padding=True))
    ref = reference(x, True)
    assert out.shape == ref.shape, (out.shape, ref.shape)
    assert jnp.allclose(out, ref, atol=2e-2, rtol=2e-2), "mismatch (padding=True)"

    # 2) longer sequence exercising the multi-band 2-D grid path + bf16 output
    x2 = jax.random.normal(kx2, (2, 4, 512), dtype=jnp.float32)
    out2 = jax.block_until_ready(
        patch_embedding(x2, weight, bias, patch_len, stride, padding=True,
                        ne_tile=1024, out_dtype=jnp.bfloat16))
    ref2 = reference(x2, True)
    assert out2.shape == ref2.shape, (out2.shape, ref2.shape)
    assert jnp.allclose(out2.astype(jnp.float32), ref2, atol=3e-2, rtol=3e-2), \
        "mismatch (banded path)"

    # 3) padding=False branch
    out3 = jax.block_until_ready(
        patch_embedding(x, weight, bias, patch_len, stride, padding=False))
    ref3 = reference(x, False)
    assert out3.shape == ref3.shape, (out3.shape, ref3.shape)
    assert jnp.allclose(out3, ref3, atol=2e-2, rtol=2e-2), "mismatch (padding=False)"

    print("KERNEL_OK")
</pallas_src>

<mosaic_0001>
module attributes {stable_mosaic.version = 11 : i64} {
  func.func @_patch_embed_kernel(%arg0: i32, %arg1: i32, %arg2: memref<1x8x20xbf16, #tpu.memory_space<vmem>>, %arg3: memref<20x128xbf16, #tpu.memory_space<vmem>>, %arg4: memref<1x128xf32, #tpu.memory_space<vmem>>, %arg5: memref<8x128xf32, #tpu.memory_space<vmem>>) attributes {dimension_semantics = [#tpu.dimension_semantics<parallel>, #tpu.dimension_semantics<parallel>], iteration_bounds = array<i64: 1, 1>, scalar_prefetch = 0 : i64, scratch_operands = 0 : i64, tpu.core_type = #tpu.core_type<tc>, window_params = [{transform_indices = @transform_0, window_bounds = array<i64: 1, 8, 20>}, {pipeline_mode = #tpu.pipeline_mode<synchronous>, transform_indices = @transform_1, window_bounds = array<i64: 20, 128>}, {pipeline_mode = #tpu.pipeline_mode<synchronous>, transform_indices = @transform_2, window_bounds = array<i64: 1, 128>}, {transform_indices = @transform_3, window_bounds = array<i64: 8, 128>}]} {
    %c0 = arith.constant 0 : index
    %c0_0 = arith.constant 0 : index
    %c0_1 = arith.constant 0 : index
    %0 = vector.load %arg2[%c0, %c0_0, %c0_1] : memref<1x8x20xbf16, #tpu.memory_space<vmem>>, vector<1x8x20xbf16>
    %1 = vector.shape_cast %0 : vector<1x8x20xbf16> to vector<8x20xbf16>
    %c0_2 = arith.constant 0 : index
    %c0_3 = arith.constant 0 : index
    %2 = vector.load %arg3[%c0_2, %c0_3] : memref<20x128xbf16, #tpu.memory_space<vmem>>, vector<20x128xbf16>
    %cst = arith.constant dense<0.000000e+00> : vector<8x128xf32>
    %3 = tpu.matmul %1, %2, %cst {dimension_numbers = #tpu.dot_dimension_numbers<[1], [0], [0], [1], [0, 0, 1, 1], [], []>} : vector<8x20xbf16>, vector<20x128xbf16>, vector<8x128xf32> -> vector<8x128xf32>
    %c0_4 = arith.constant 0 : index
    %c0_5 = arith.constant 0 : index
    %4 = vector.load %arg4[%c0_4, %c0_5] : memref<1x128xf32, #tpu.memory_space<vmem>>, vector<1x128xf32>
    %5 = vector.broadcast %4 : vector<1x128xf32> to vector<8x128xf32>
    %6 = arith.addf %3, %5 : vector<8x128xf32>
    %c0_6 = arith.constant 0 : index
    %c0_7 = arith.constant 0 : index
    %7 = vector.load %arg5[%c0_6, %c0_7] : memref<8x128xf32, #tpu.memory_space<vmem>>, vector<8x128xf32>
    tpu.vector_store %arg5[%c0_6, %c0_7], %6 {strides = array<i32>} : memref<8x128xf32, #tpu.memory_space<vmem>>, vector<8x128xf32>,
    return
  }
  func.func @transform_0(%arg0: i32, %arg1: i32) -> (i32, i32, i32) {
    %c0_i32 = arith.constant 0 : i32
    %c0_i32_0 = arith.constant 0 : i32
    return %arg1, %arg0, %c0_i32 : i32, i32, i32
  }
  func.func @transform_1(%arg0: i32, %arg1: i32) -> (i32, i32) {
    %c0_i32 = arith.constant 0 : i32
    %c0_i32_0 = arith.constant 0 : i32
    %c0_i32_1 = arith.constant 0 : i32
    return %c0_i32, %c0_i32_0 : i32, i32
  }
  func.func @transform_2(%arg0: i32, %arg1: i32) -> (i32, i32) {
    %c0_i32 = arith.constant 0 : i32
    %c0_i32_0 = arith.constant 0 : i32
    %c0_i32_1 = arith.constant 0 : i32
    return %c0_i32, %c0_i32_0 : i32, i32
  }
  func.func @transform_3(%arg0: i32, %arg1: i32) -> (i32, i32) {
    %c0_i32 = arith.constant 0 : i32
    return %arg0, %arg1 : i32, i32
  }
}

module attributes {stable_mosaic.version = 11 : i64} {
  func.func @_patch_embed_kernel(%arg0: i32, %arg1: i32, %arg2: memref<1x8x20xbf16, #tpu.memory_space<vmem>>, %arg3: memref<20x128xbf16, #tpu.memory_space<vmem>>, %arg4: memref<1x128xf32, #tpu.memory_space<vmem>>, %arg5: memref<8x128xf32, #tpu.memory_space<vmem>>) attributes {dimension_semantics = [#tpu.dimension_semantics<parallel>, #tpu.dimension_semantics<parallel>], iteration_bounds = array<i64: 1, 1>, scalar_prefetch = 0 : i64, scratch_operands = 0 : i64, tpu.core_type = #tpu.core_type<tc>, window_params = [{transform_indices = @transform_0, window_bounds = array<i64: 1, 8, 20>}, {pipeline_mode = #tpu.pipeline_mode<synchronous>, transform_indices = @transform_1, window_bounds = array<i64: 20, 128>}, {pipeline_mode = #tpu.pipeline_mode<synchronous>, transform_indices = @transform_2, window_bounds = array<i64: 1, 128>}, {transform_indices = @transform_3, window_bounds = array<i64: 8, 128>}]} {
    %c0 = arith.constant 0 : index
    %c0_0 = arith.constant 0 : index
    %c0_1 = arith.constant 0 : index
    %0 = vector.load %arg2[%c0, %c0_0, %c0_1] : memref<1x8x20xbf16, #tpu.memory_space<vmem>>, vector<1x8x20xbf16>
    %1 = vector.shape_cast %0 : vector<1x8x20xbf16> to vector<8x20xbf16>
    %c0_2 = arith.constant 0 : index
    %c0_3 = arith.constant 0 : index
    %2 = vector.load %arg3[%c0_2, %c0_3] : memref<20x128xbf16, #tpu.memory_space<vmem>>, vector<20x128xbf16>
    %cst = arith.constant dense<0.000000e+00> : vector<8x128xf32>
    %3 = tpu.matmul %1, %2, %cst {dimension_numbers = #tpu.dot_dimension_numbers<[1], [0], [0], [1], [0, 0, 1, 1], [], []>} : vector<8x20xbf16>, vector<20x128xbf16>, vector<8x128xf32> -> vector<8x128xf32>
    %c0_4 = arith.constant 0 : index
    %c0_5 = arith.constant 0 : index
    %4 = vector.load %arg4[%c0_4, %c0_5] : memref<1x128xf32, #tpu.memory_space<vmem>>, vector<1x128xf32>
    %5 = vector.broadcast %4 : vector<1x128xf32> to vector<8x128xf32>
    %6 = arith.addf %3, %5 : vector<8x128xf32>
    %c0_6 = arith.constant 0 : index
    %c0_7 = arith.constant 0 : index
    %7 = vector.load %arg5[%c0_6, %c0_7] : memref<8x128xf32, #tpu.memory_space<vmem>>, vector<8x128xf32>
    tpu.vector_store %arg5[%c0_6, %c0_7], %6 {strides = array<i32>} : memref<8x128xf32, #tpu.memory_space<vmem>>, vector<8x128xf32>,
    return
  }
  func.func @transform_0(%arg0: i32, %arg1: i32) -> (i32, i32, i32) {
    %c0_i32 = arith.constant 0 : i32
    %c0_i32_0 = arith.constant 0 : i32
    return %arg1, %arg0, %c0_i32 : i32, i32, i32
  }
  func.func @transform_1(%arg0: i32, %arg1: i32) -> (i32, i32) {
    %c0_i32 = arith.constant 0 : i32
    %c0_i32_0 = arith.constant 0 : i32
    %c0_i32_1 = arith.constant 0 : i32
    return %c0_i32, %c0_i32_0 : i32, i32
  }
  func.func @transform_2(%arg0: i32, %arg1: i32) -> (i32, i32) {
    %c0_i32 = arith.constant 0 : i32
    %c0_i32_0 = arith.constant 0 : i32
    %c0_i32_1 = arith.constant 0 : i32
    return %c0_i32, %c0_i32_0 : i32, i32
  }
  func.func @transform_3(%arg0: i32, %arg1: i32) -> (i32, i32) {
    %c0_i32 = arith.constant 0 : i32
    return %arg0, %arg1 : i32, i32
  }
}

</mosaic_0001>

<bundles_post_ra>
// kernel: tpu_custom_call.1
= control target key start
LH: loop header
LB: loop body
LE: loop exit
PB: predicated region body
PF: predicated region fallthrough
CT: control target
= control target key end

     0   :  { %8 = vsyncpa [#allocation3], 0  ;;  %s296_s0 = inlined_call_operand.hbm [shape: bf16[1,8,20], index: 0, kind: input, shape index: {}]   ;;  %s297_s1 = inlined_call_operand.hbm [shape: bf16[20,128], index: 1, kind: input, shape index: {}]   ;;  %s298_s2 = inlined_call_operand.vmem [shape: f32[1,128], index: 2, kind: input, shape index: {}]   ;;  %s299_s3 = inlined_call_operand.hbm [shape: f32[8,128], index: 3, kind: output, shape index: {}]  }
   0x1   :  { %9 = vsyncpa [#allocation6], 0 }
   0x2   :  { %10 = vsyncpa [#allocation4], 0  ;;  %s223_s12 = smov [#allocation2]   ;;  %s224_s14 = smov [#allocation5]  }
   0x3   :  { %s17_s13 = sshll.u32 %s223_s12, 4  ;;  %s26_s15 = sshll.u32 %s224_s14, 4  ;;  %s18_s13 = int_to_ptr.vmem [resolvable:$true] %s17_s13  ;;  %s250_s15 = int_to_ptr.vmem [resolvable:$true] %s26_s15 }
   0x4   :  { %s151_s18 = scalar_lea.hbm %s296_s0, 64 }
   0x5   :  { %p152_p0 = scmp.ne.s32.totalorder %s296_s0, %s151_s18  ;;  %p155_p1 = scmp.lt.u32.totalorder %s151_s18, %s296_s0 }
   0x7   :  { %p157_p2 = pnand %p155_p1, %p152_p0 }
   0x9   :  { %160 = shalt.err (!%p157_p2)
}
   0xa   :  { %s161_s23 = scalar_lea.vmem %s18_s13, 64  ;;  %p166_p4 = scmp.lt.s32.totalorder %s18_s13, %s18_s13 }
   0xb   :  { %p162_p3 = scmp.ne.s32.totalorder %s18_s13, %s161_s23  ;;  %p167_p5 = scmp.lt.s32.totalorder %s161_s23, %s161_s23 }
   0xd   :  { %p168_p6 = por %p167_p5, %p166_p4 }
   0xf   :  { %p169_p7 = pnand %p168_p6, %p162_p3 }
  0x11   :  { %172 = shalt.err (!%p169_p7)
}
  0x12   :  { %20 = dma.hbm_to_vmem [thread:$0]  %s296_s0, 64, %s18_s13, [#allocation3]  }
  0x13   :  { %s173_s28 = scalar_lea.hbm %s297_s1, 192 }
  0x14   :  { %p174_p8 = scmp.ne.s32.totalorder %s297_s1, %s173_s28  ;;  %p177_p9 = scmp.lt.u32.totalorder %s173_s28, %s297_s1 }
  0x16   :  { %p179_p10 = pnand %p177_p9, %p174_p8 }
  0x18   :  { %182 = shalt.err (!%p179_p10)
}
  0x19   :  { %s183_s6 = scalar_lea.vmem %s250_s15, 192  ;;  %p188_p12 = scmp.lt.s32.totalorder %s250_s15, %s250_s15 }
  0x1a   :  { %p184_p11 = scmp.ne.s32.totalorder %s250_s15, %s183_s6  ;;  %p189_p13 = scmp.lt.s32.totalorder %s183_s6, %s183_s6 }
  0x1c   :  { %p190_p0 = por %p189_p13, %p188_p12 }
  0x1e   :  { %p191_p1 = pnand %p190_p0, %p184_p11 }
  0x20   :  { %194 = shalt.err (!%p191_p1)
}
  0x21   :  { %s225_s0 = smov 64   ;;  %s226_s7 = smov 4  }
  0x22   :  { %32 = dma.hbm_to_vmem [thread:$0]  %s297_s1, 192, %s250_s15, [#allocation6], %s225_s0, %s225_s0, %s226_s7  }
  0x23   :  { %217 = dma.done.wait [#allocation3], 64  }
  0x24   :  { %218 = vsyncadd [#allocation3], 4294967232 }
  0x25   :  { %219 = dma.done.wait [#allocation6], 192  }
  0x26   :  { %220 = vsyncadd [#allocation6], 4294967104  ;;  %v227_v0 = vmov 0.0   ;;  %vm228_vm0 = vmmov 0   ;;  %v149_v1 = vld [vmem:[#allocation5] sm:$0xff]   ;;  %vm66_vm1 = vcmask 1041408  }
  0x27   :  { %134 = vmatprep.subr.bf16.mxu0 %v227_v0  ;;  %138 = vmatprep.mubr.msk.bf16.mxu0 %vm228_vm0, %v227_v0  ;;  %v150_v2 = vld [vmem:[#allocation5 + $0x8] ss:$0 sps:$4 sm:$0x33]   ;;  %v42_v4 = vld [vmem:[#allocation2] sm:$0xf]  ;;  %vm62_vm2 = vcmask 162816  }
  0x28   :  { %135 = vmatpush3.bf16.msra.mxu0 %v149_v1  ;;  %v68_v3 = vsel %vm66_vm1, %v150_v2, 0  ;;  %v127_v5 = vld [vmem:[%s298_s2] ss:$0 sm:$0xff]  ;;  %s229_s11 = smov [#allocation7]  }
  0x29   :  { %136 = vmatprep.subr.bf16.mxu0 %v227_v0  ;;  %s117_s12 = sshll.u32 %s229_s11, 4  ;;  %s118_s12 = int_to_ptr.vmem [resolvable:$true] %s117_s12 }
  0x2a   :  { %s195_s13 = scalar_lea.vmem %s118_s12, 128  ;;  %p200_p3 = scmp.lt.s32.totalorder %s118_s12, %s118_s12 }
  0x2b   :  { %p196_p2 = scmp.ne.s32.totalorder %s118_s12, %s195_s13  ;;  %p201_p4 = scmp.lt.s32.totalorder %s195_s13, %s195_s13 }
  0x2c   :  { %137 = vmatpush3.bf16.msra.mxu0 %v68_v3 }
  0x2d   :  { %p202_p5 = por %p201_p4, %p200_p3 }
  0x2f   :  { %139 = vmatmul.mubr.msk.bf16.vlgmr.msra.gmra.mrb[0].mxu0 %vm62_vm2, %v42_v4  ;;  %p203_p6 = pnand %p202_p5, %p196_p2 }
 0x102   :  { %v104_v6 = vpop.f32.mrb[0].mxu0 }
 0x103   :  { %v105_v7 = vadd.f32 %v127_v5, %v104_v6  ;;  %v140_v8 = vpop.f32.mrb[1].mxu0 }
 0x104   :  { %v107_v9 = vpop.f32.mrb[2].mxu0 }
 0x105   :  { %110 = vst [vmem:[#allocation7] sm:$0xff] %v105_v7  ;;  %v141_v10 = vpop.f32.mrb[3].mxu0 }
 0x106   :  { %206 = shalt.err (!%p203_p6)
}
 0x107   :  { %s207_s2 = scalar_lea.hbm %s299_s3, 128 }
 0x108   :  { %p208_p7 = scmp.ne.s32.totalorder %s299_s3, %s207_s2  ;;  %p211_p8 = scmp.lt.u32.totalorder %s207_s2, %s299_s3 }
 0x10a   :  { %p213_p9 = pnand %p211_p8, %p208_p7 }
 0x10c   :  { %216 = shalt.err (!%p213_p9)
}
 0x10d   :  { %120 = dma.vmem_to_hbm [thread:$0]  %s118_s12, 128, %s299_s3, [#allocation4]  }
 0x10e   :  { %221 = dma.done.wait [#allocation4], 128  }
 0x10f   :  { %222 = vsyncadd [#allocation4], 4294967168 }
 0x110   :  { %124 = vsyncpa [#allocation3], 1 }
 0x111   :  { %125 = vsyncpa [#allocation6], 1 }
 0x112   :  { %126 = vsyncpa [#allocation4], 1 }

// kernel: tpu_custom_call.1
= control target key start
LH: loop header
LB: loop body
LE: loop exit
PB: predicated region body
PF: predicated region fallthrough
CT: control target
= control target key end

     0   :  { %8 = vsyncpa [#allocation3], 0  ;;  %s296_s0 = inlined_call_operand.hbm [shape: bf16[1,8,20], index: 0, kind: input, shape index: {}]   ;;  %s297_s1 = inlined_call_operand.hbm [shape: bf16[20,128], index: 1, kind: input, shape index: {}]   ;;  %s298_s2 = inlined_call_operand.vmem [shape: f32[1,128], index: 2, kind: input, shape index: {}]   ;;  %s299_s3 = inlined_call_operand.hbm [shape: f32[8,128], index: 3, kind: output, shape index: {}]  }
   0x1   :  { %9 = vsyncpa [#allocation6], 0 }
   0x2   :  { %10 = vsyncpa [#allocation4], 0  ;;  %s223_s12 = smov [#allocation2]   ;;  %s224_s14 = smov [#allocation5]  }
   0x3   :  { %s17_s13 = sshll.u32 %s223_s12, 4  ;;  %s26_s15 = sshll.u32 %s224_s14, 4  ;;  %s18_s13 = int_to_ptr.vmem [resolvable:$true] %s17_s13  ;;  %s250_s15 = int_to_ptr.vmem [resolvable:$true] %s26_s15 }
   0x4   :  { %s151_s18 = scalar_lea.hbm %s296_s0, 64 }
   0x5   :  { %p152_p0 = scmp.ne.s32.totalorder %s296_s0, %s151_s18  ;;  %p155_p1 = scmp.lt.u32.totalorder %s151_s18, %s296_s0 }
   0x7   :  { %p157_p2 = pnand %p155_p1, %p152_p0 }
   0x9   :  { %160 = shalt.err (!%p157_p2)
}
   0xa   :  { %s161_s23 = scalar_lea.vmem %s18_s13, 64  ;;  %p166_p4 = scmp.lt.s32.totalorder %s18_s13, %s18_s13 }
   0xb   :  { %p162_p3 = scmp.ne.s32.totalorder %s18_s13, %s161_s23  ;;  %p167_p5 = scmp.lt.s32.totalorder %s161_s23, %s161_s23 }
   0xd   :  { %p168_p6 = por %p167_p5, %p166_p4 }
   0xf   :  { %p169_p7 = pnand %p168_p6, %p162_p3 }
  0x11   :  { %172 = shalt.err (!%p169_p7)
}
  0x12   :  { %20 = dma.hbm_to_vmem [thread:$0]  %s296_s0, 64, %s18_s13, [#allocation3]  }
  0x13   :  { %s173_s28 = scalar_lea.hbm %s297_s1, 192 }
  0x14   :  { %p174_p8 = scmp.ne.s32.totalorder %s297_s1, %s173_s28  ;;  %p177_p9 = scmp.lt.u32.totalorder %s173_s28, %s297_s1 }
  0x16   :  { %p179_p10 = pnand %p177_p9, %p174_p8 }
  0x18   :  { %182 = shalt.err (!%p179_p10)
}
  0x19   :  { %s183_s6 = scalar_lea.vmem %s250_s15, 192  ;;  %p188_p12 = scmp.lt.s32.totalorder %s250_s15, %s250_s15 }
  0x1a   :  { %p184_p11 = scmp.ne.s32.totalorder %s250_s15, %s183_s6  ;;  %p189_p13 = scmp.lt.s32.totalorder %s183_s6, %s183_s6 }
  0x1c   :  { %p190_p0 = por %p189_p13, %p188_p12 }
  0x1e   :  { %p191_p1 = pnand %p190_p0, %p184_p11 }
  0x20   :  { %194 = shalt.err (!%p191_p1)
}
  0x21   :  { %s225_s0 = smov 64   ;;  %s226_s7 = smov 4  }
  0x22   :  { %32 = dma.hbm_to_vmem [thread:$0]  %s297_s1, 192, %s250_s15, [#allocation6], %s225_s0, %s225_s0, %s226_s7  }
  0x23   :  { %217 = dma.done.wait [#allocation3], 64  }
  0x24   :  { %218 = vsyncadd [#allocation3], 4294967232 }
  0x25   :  { %219 = dma.done.wait [#allocation6], 192  }
  0x26   :  { %220 = vsyncadd [#allocation6], 4294967104  ;;  %v227_v0 = vmov 0.0   ;;  %vm228_vm0 = vmmov 0   ;;  %v149_v1 = vld [vmem:[#allocation5] sm:$0xff]   ;;  %vm66_vm1 = vcmask 1041408  }
  0x27   :  { %134 = vmatprep.subr.bf16.mxu0 %v227_v0  ;;  %138 = vmatprep.mubr.msk.bf16.mxu0 %vm228_vm0, %v227_v0  ;;  %v150_v2 = vld [vmem:[#allocation5 + $0x8] ss:$0 sps:$4 sm:$0x33]   ;;  %v42_v4 = vld [vmem:[#allocation2] sm:$0xf]  ;;  %vm62_vm2 = vcmask 162816  }
  0x28   :  { %135 = vmatpush3.bf16.msra.mxu0 %v149_v1  ;;  %v68_v3 = vsel %vm66_vm1, %v150_v2, 0  ;;  %v127_v5 = vld [vmem:[%s298_s2] ss:$0 sm:$0xff]  ;;  %s229_s11 = smov [#allocation7]  }
  0x29   :  { %136 = vmatprep.subr.bf16.mxu0 %v227_v0  ;;  %s117_s12 = sshll.u32 %s229_s11, 4  ;;  %s118_s12 = int_to_ptr.vmem [resolvable:$true] %s117_s12 }
  0x2a   :  { %s195_s13 = scalar_lea.vmem %s118_s12, 128  ;;  %p200_p3 = scmp.lt.s32.totalorder %s118_s12, %s118_s12 }
  0x2b   :  { %p196_p2 = scmp.ne.s32.totalorder %s118_s12, %s195_s13  ;;  %p201_p4 = scmp.lt.s32.totalorder %s195_s13, %s195_s13 }
  0x2c   :  { %137 = vmatpush3.bf16.msra.mxu0 %v68_v3 }
  0x2d   :  { %p202_p5 = por %p201_p4, %p200_p3 }
  0x2f   :  { %139 = vmatmul.mubr.msk.bf16.vlgmr.msra.gmra.mrb[0].mxu0 %vm62_vm2, %v42_v4  ;;  %p203_p6 = pnand %p202_p5, %p196_p2 }
 0x102   :  { %v104_v6 = vpop.f32.mrb[0].mxu0 }
 0x103   :  { %v105_v7 = vadd.f32 %v127_v5, %v104_v6  ;;  %v140_v8 = vpop.f32.mrb[1].mxu0 }
 0x104   :  { %v107_v9 = vpop.f32.mrb[2].mxu0 }
 0x105   :  { %110 = vst [vmem:[#allocation7] sm:$0xff] %v105_v7  ;;  %v141_v10 = vpop.f32.mrb[3].mxu0 }
 0x106   :  { %206 = shalt.err (!%p203_p6)
}
 0x107   :  { %s207_s2 = scalar_lea.hbm %s299_s3, 128 }
 0x108   :  { %p208_p7 = scmp.ne.s32.totalorder %s299_s3, %s207_s2  ;;  %p211_p8 = scmp.lt.u32.totalorder %s207_s2, %s299_s3 }
 0x10a   :  { %p213_p9 = pnand %p211_p8, %p208_p7 }
 0x10c   :  { %216 = shalt.err (!%p213_p9)
}
 0x10d   :  { %120 = dma.vmem_to_hbm [thread:$0]  %s118_s12, 128, %s299_s3, [#allocation4]  }
 0x10e   :  { %221 = dma.done.wait [#allocation4], 128  }
 0x10f   :  { %222 = vsyncadd [#allocation4], 4294967168 }
 0x110   :  { %124 = vsyncpa [#allocation3], 1 }
 0x111   :  { %125 = vsyncpa [#allocation6], 1 }
 0x112   :  { %126 = vsyncpa [#allocation4], 1 }

</bundles_post_ra>
